<compile_context>
chip_gen: v7x
topology: tpu7x:2x2x1
jax: 0.10.0
libtpu: 0.0.40
codegen_flags: <defaults>
</compile_context>

<pallas_src>
import math

import jax
import jax.numpy as jnp
from jax import lax
from jax.experimental import pallas as pl
from jax.experimental.pallas import tpu as pltpu


def _round_up(x: int, m: int) -> int:
    return ((x + m - 1) // m) * m


def _pad2(arr, rows, cols):
    pr, pc = rows - arr.shape[0], cols - arr.shape[1]
    if pr or pc:
        arr = jnp.pad(arr, ((0, pr), (0, pc)))
    return arr


def _lora_linear_kernel(x_ref, w_ref, xa_ref, b_ref, bias_ref, o_ref, acc_ref):
    # Grid = (M/tm, N/tn, K/tk); k (axis 2) is the innermost reduction axis.
    #   x_ref:    (tm, tk)        activations (compute dtype)
    #   w_ref:    (tk, tn)        frozen W, pre-transposed to MXU-canonical (K, N)
    #   xa_ref:   (tm, rank_pad)  precomputed (x @ A.T) * scaling, resident over j,k
    #   b_ref:    (rank_pad, tn)  lora_B pre-transposed to (rank, N)
    #   bias_ref: (1, tn)         f32 bias row
    #   o_ref:    (tm, tn)        output tile
    #   acc_ref:  (tm, tn)        f32 VMEM accumulator for the base matmul
    k = pl.program_id(2)

    @pl.when(k == 0)
    def _():
        acc_ref[...] = jnp.zeros_like(acc_ref)

    # Frozen-path partial: canonical (tm, tk) @ (tk, tn), f32 accumulation.
    acc_ref[...] += jnp.dot(x_ref[...], w_ref[...],
                            preferred_element_type=jnp.float32)

    @pl.when(k == pl.num_programs(2) - 1)
    def _():
        # LoRA second stage, once per (i, j) output tile: (tm, r) @ (r, tn).
        lora = jnp.dot(xa_ref[...], b_ref[...],
                       preferred_element_type=jnp.float32)
        o_ref[...] = (acc_ref[...] + bias_ref[...] + lora).astype(o_ref.dtype)


def prepare_lora_weights(w_frozen, bias, lora_A, lora_B, alpha, *,
                         compute_dtype=jnp.bfloat16,
                         tn_target=512, tk_target=1024):
    """One-time weight preparation (do at load time, NOT per forward call):
    pre-transpose to MXU-canonical layouts, pre-pad to tile multiples, and
    pre-cast to the compute dtype so the hot path never re-touches W in XLA.

    w_frozen: (out_features, in_features)   -- PyTorch nn.Linear weight layout
    bias:     (out_features,) or None
    lora_A:   (rank, in_features)
    lora_B:   (out_features, rank)
    """
    out_features, in_features = w_frozen.shape
    rank = int(lora_A.shape[0])
    scaling = float(alpha) / float(rank)

    cd = jnp.dtype(compute_dtype) if compute_dtype is not None else jnp.dtype(
        w_frozen.dtype)

    tk = min(tk_target, _round_up(in_features, 128))
    tn = min(tn_target, _round_up(out_features, 128))
    rank_pad = _round_up(rank, 128)          # lane-dense LoRA intermediate
    k_pad = _round_up(in_features, tk)
    n_pad = _round_up(out_features, tn)

    w_t = _pad2(w_frozen.T.astype(cd), k_pad, n_pad)        # (K_pad, N_pad)
    b_t = _pad2(lora_B.T.astype(cd), rank_pad, n_pad)       # (rank_pad, N_pad)
    a = lora_A.astype(cd)                                   # (rank, K) for xa GEMM
    if bias is None:
        bias2d = jnp.zeros((1, n_pad), dtype=jnp.float32)
    else:
        bias2d = _pad2(bias.reshape(1, out_features).astype(jnp.float32), 1, n_pad)

    return dict(w_t=w_t, b_t=b_t, lora_A=a, bias2d=bias2d, scaling=scaling,
                in_features=in_features, out_features=out_features,
                rank=rank, rank_pad=rank_pad,
                tn=tn, tk=tk, k_pad=k_pad, n_pad=n_pad, compute_dtype=cd)


def lora_linear_prepared(x, prep, *, tm_target=512,
                         vmem_limit_bytes=48 * 1024 * 1024):
    """Forward pass using pre-prepared weights (see prepare_lora_weights)."""
    in_f, out_f = prep["in_features"], prep["out_features"]
    tn, tk = prep["tn"], prep["tk"]
    k_pad, n_pad = prep["k_pad"], prep["n_pad"]
    rank_pad = prep["rank_pad"]
    cd = prep["compute_dtype"]

    orig_shape = x.shape
    out_dtype = x.dtype
    xm = x.reshape(-1, in_f).astype(cd)
    m = xm.shape[0]

    # LoRA first stage, hoisted out of the (i, j, k) grid: one tiny (M x rank)
    # GEMM instead of a full-width MXU pass per grid step.  Scaling is applied
    # to the f32 result (not folded into bf16 A) to avoid precision loss.
    xa = lax.dot_general(xm, prep["lora_A"],
                         dimension_numbers=(((1,), (1,)), ((), ())),
                         preferred_element_type=jnp.float32)
    xa = (xa * prep["scaling"]).astype(cd)

    tm = min(tm_target, _round_up(m, 8))
    m_pad = _round_up(m, tm)

    xp = _pad2(xm, m_pad, k_pad)
    xap = _pad2(xa, m_pad, rank_pad)

    grid = (m_pad // tm, n_pad // tn, k_pad // tk)

    flops = 2 * m * in_f * out_f + 2 * m * rank_pad * out_f
    bytes_accessed = int(
        xp.size * xp.dtype.itemsize
        + prep["w_t"].size * prep["w_t"].dtype.itemsize
        + xap.size * xap.dtype.itemsize
        + prep["b_t"].size * prep["b_t"].dtype.itemsize
        + prep["bias2d"].size * 4
        + m_pad * n_pad * jnp.dtype(out_dtype).itemsize)

    out = pl.pallas_call(
        _lora_linear_kernel,
        out_shape=jax.ShapeDtypeStruct((m_pad, n_pad), out_dtype),
        grid_spec=pltpu.PrefetchScalarGridSpec(
            num_scalar_prefetch=0,
            grid=grid,
            in_specs=[
                pl.BlockSpec((tm, tk), lambda i, j, k: (i, k)),        # x
                pl.BlockSpec((tk, tn), lambda i, j, k: (k, j)),        # W^T  (K, N)
                pl.BlockSpec((tm, rank_pad), lambda i, j, k: (i, 0)),  # xa (resident)
                pl.BlockSpec((rank_pad, tn), lambda i, j, k: (0, j)),  # B^T  (r, N)
                pl.BlockSpec((1, tn), lambda i, j, k: (0, j)),         # bias
            ],
            out_specs=pl.BlockSpec((tm, tn), lambda i, j, k: (i, j)),
            scratch_shapes=[pltpu.VMEM((tm, tn), jnp.float32)],
        ),
        compiler_params=pltpu.CompilerParams(
            # xa is a plain input (no cross-j accumulator), so both i and j are
            # safe to shard across TensorCores (v7x megacore); k is reduction.
            dimension_semantics=("parallel", "parallel", "arbitrary"),
            vmem_limit_bytes=vmem_limit_bytes,
        ),
        cost_estimate=pl.CostEstimate(
            flops=flops, transcendentals=0, bytes_accessed=bytes_accessed),
    )(xp, prep["w_t"], xap, prep["b_t"], prep["bias2d"])

    out = out[:m, :out_f]
    return out.reshape(*orig_shape[:-1], out_f)


def lora_linear(x, w_frozen, bias, lora_A, lora_B, alpha, *,
                compute_dtype=jnp.bfloat16,
                tm_target=512, tn_target=512, tk_target=1024):
    """Convenience wrapper; real deployments should call prepare_lora_weights
    once and reuse the result across forward calls."""
    prep = prepare_lora_weights(w_frozen, bias, lora_A, lora_B, alpha,
                                compute_dtype=compute_dtype,
                                tn_target=tn_target, tk_target=tk_target)
    return lora_linear_prepared(x, prep, tm_target=tm_target)


def _reference(x, w, bias, A, B, alpha):
    """Pure-JAX reference (highest precision) matching the PyTorch forward."""
    scaling = alpha / A.shape[0]
    base = jnp.einsum("...k,nk->...n", x, w, precision="highest")
    if bias is not None:
        base = base + bias
    xa = jnp.einsum("...k,rk->...r", x, A, precision="highest")
    lora = jnp.einsum("...r,nr->...n", xa, B, precision="highest") * scaling
    return base + lora


if __name__ == "__main__":
    key = jax.random.PRNGKey(0)
    kx, kw, kb, ka, kbb, kx2, kw2, ka2, kbb2, kx3 = jax.random.split(key, 10)

    # ---- Config 1: small shapes consistent with the module, f32 compute ----
    batch, seq, in_f, out_f, rank, alpha = 2, 8, 32, 64, 4, 1.0
    x = jax.random.normal(kx, (batch, seq, in_f), dtype=jnp.float32)
    w = jax.random.normal(kw, (out_f, in_f), dtype=jnp.float32) * 0.05
    b = jax.random.normal(kb, (out_f,), dtype=jnp.float32) * 0.1
    A = jax.random.normal(ka, (rank, in_f), dtype=jnp.float32) / math.sqrt(rank)
    # The module initializes lora_B to zeros; use small nonzero values so the
    # LoRA path is actually exercised by the check.
    B = jax.random.normal(kbb, (out_f, rank), dtype=jnp.float32) * 0.05

    ref = _reference(x, w, b, A, B, alpha)

    out_f32 = jax.block_until_ready(
        lora_linear(x, w, b, A, B, alpha, compute_dtype=None))
    assert out_f32.shape == (batch, seq, out_f)
    # Tolerance covers the TPU MXU's reduced-precision handling of f32 operands.
    assert jnp.allclose(out_f32, ref, atol=1e-2, rtol=1e-2), "f32 mismatch (config 1)"

    # ---- Config 1b: prepared weights (prep once, reuse), default bf16 path ----
    prep = prepare_lora_weights(w, b, A, B, alpha)   # bf16 compute by default
    out_bf16 = jax.block_until_ready(lora_linear_prepared(x, prep))
    assert out_bf16.dtype == x.dtype
    assert jnp.allclose(out_bf16, ref, atol=5e-2, rtol=5e-2), "bf16 mismatch (1b)"

    x3 = jax.random.normal(kx3, (batch, seq, in_f), dtype=jnp.float32)
    out3 = jax.block_until_ready(lora_linear_prepared(x3, prep))   # reuse prep
    ref3 = _reference(x3, w, b, A, B, alpha)
    assert jnp.allclose(out3, ref3, atol=5e-2, rtol=5e-2), "bf16 mismatch (1b reuse)"

    # ---- Config 2: ragged dims (padding / tail handling), no bias, f32 ----
    b2, s2, in2, out2, r2, a2 = 3, 5, 40, 72, 3, 2.0
    x2 = jax.random.normal(kx2, (b2, s2, in2), dtype=jnp.float32)
    w2 = jax.random.normal(kw2, (out2, in2), dtype=jnp.float32) * 0.05
    A2 = jax.random.normal(ka2, (r2, in2), dtype=jnp.float32) / math.sqrt(r2)
    B2 = jax.random.normal(kbb2, (out2, r2), dtype=jnp.float32) * 0.05

    out2_k = jax.block_until_ready(
        lora_linear(x2, w2, None, A2, B2, a2, compute_dtype=None))
    ref2 = _reference(x2, w2, None, A2, B2, a2)
    assert out2_k.shape == (b2, s2, out2)
    assert jnp.allclose(out2_k, ref2, atol=1e-2, rtol=1e-2), "f32 mismatch (config 2)"

    print("KERNEL_OK")
</pallas_src>

<mosaic_0001>
module attributes {stable_mosaic.version = 11 : i64} {
  func.func @_lora_linear_kernel(%arg0: i32, %arg1: i32, %arg2: i32, %arg3: memref<16x128xf32, #tpu.memory_space<vmem>>, %arg4: memref<128x128xf32, #tpu.memory_space<vmem>>, %arg5: memref<16x128xf32, #tpu.memory_space<vmem>>, %arg6: memref<128x128xf32, #tpu.memory_space<vmem>>, %arg7: memref<1x128xf32, #tpu.memory_space<vmem>>, %arg8: memref<16x128xf32, #tpu.memory_space<vmem>>, %arg9: memref<16x128xf32, #tpu.memory_space<vmem>>) attributes {dimension_semantics = [#tpu.dimension_semantics<parallel>, #tpu.dimension_semantics<parallel>, #tpu.dimension_semantics<arbitrary>], iteration_bounds = array<i64: 1, 1, 1>, scalar_prefetch = 0 : i64, scratch_operands = 1 : i64, tpu.core_type = #tpu.core_type<tc>, window_params = [{transform_indices = @transform_0, window_bounds = array<i64: 16, 128>}, {transform_indices = @transform_1, window_bounds = array<i64: 128, 128>}, {transform_indices = @transform_2, window_bounds = array<i64: 16, 128>}, {transform_indices = @transform_3, window_bounds = array<i64: 128, 128>}, {transform_indices = @transform_4, window_bounds = array<i64: 1, 128>}, {transform_indices = @transform_5, window_bounds = array<i64: 16, 128>}]} {
    %c0_i32 = arith.constant 0 : i32
    %0 = arith.cmpi eq, %arg2, %c0_i32 : i32
    %1 = arith.extui %0 : i1 to i32
    %c0_i32_0 = arith.constant 0 : i32
    %2 = arith.cmpi ne, %1, %c0_i32_0 : i32
    scf.if %2 {
      %cst_10 = arith.constant 0.000000e+00 : f32
      %12 = vector.broadcast %cst_10 : f32 to vector<16x128xf32>
      %c0_11 = arith.constant 0 : index
      %c0_12 = arith.constant 0 : index
      %13 = vector.load %arg9[%c0_11, %c0_12] : memref<16x128xf32, #tpu.memory_space<vmem>>, vector<16x128xf32>
      tpu.vector_store %arg9[%c0_11, %c0_12], %12 {strides = array<i32>} : memref<16x128xf32, #tpu.memory_space<vmem>>, vector<16x128xf32>,
    } else {
    }
    %c0 = arith.constant 0 : index
    %c0_1 = arith.constant 0 : index
    %3 = vector.load %arg9[%c0, %c0_1] : memref<16x128xf32, #tpu.memory_space<vmem>>, vector<16x128xf32>
    %c0_2 = arith.constant 0 : index
    %c0_3 = arith.constant 0 : index
    %4 = vector.load %arg3[%c0_2, %c0_3] : memref<16x128xf32, #tpu.memory_space<vmem>>, vector<16x128xf32>
    %c0_4 = arith.constant 0 : index
    %c0_5 = arith.constant 0 : index
    %5 = vector.load %arg4[%c0_4, %c0_5] : memref<128x128xf32, #tpu.memory_space<vmem>>, vector<128x128xf32>
    %cst = arith.constant dense<0.000000e+00> : vector<16x128xf32>
    %6 = tpu.matmul %4, %5, %cst {dimension_numbers = #tpu.dot_dimension_numbers<[1], [0], [0], [1], [0, 0, 1, 1], [], []>} : vector<16x128xf32>, vector<128x128xf32>, vector<16x128xf32> -> vector<16x128xf32>
    %7 = arith.addf %3, %6 : vector<16x128xf32>
    %c0_6 = arith.constant 0 : index
    %c0_7 = arith.constant 0 : index
    %8 = vector.load %arg9[%c0_6, %c0_7] : memref<16x128xf32, #tpu.memory_space<vmem>>, vector<16x128xf32>
    tpu.vector_store %arg9[%c0_6, %c0_7], %7 {strides = array<i32>} : memref<16x128xf32, #tpu.memory_space<vmem>>, vector<16x128xf32>,
    %c0_i32_8 = arith.constant 0 : i32
    %9 = arith.cmpi eq, %arg2, %c0_i32_8 : i32
    %10 = arith.extui %9 : i1 to i32
    %c0_i32_9 = arith.constant 0 : i32
    %11 = arith.cmpi ne, %10, %c0_i32_9 : i32
    scf.if %11 {
      %c0_10 = arith.constant 0 : index
      %c0_11 = arith.constant 0 : index
      %12 = vector.load %arg5[%c0_10, %c0_11] : memref<16x128xf32, #tpu.memory_space<vmem>>, vector<16x128xf32>
      %c0_12 = arith.constant 0 : index
      %c0_13 = arith.constant 0 : index
      %13 = vector.load %arg6[%c0_12, %c0_13] : memref<128x128xf32, #tpu.memory_space<vmem>>, vector<128x128xf32>
      %cst_14 = arith.constant dense<0.000000e+00> : vector<16x128xf32>
      %14 = tpu.matmul %12, %13, %cst_14 {dimension_numbers = #tpu.dot_dimension_numbers<[1], [0], [0], [1], [0, 0, 1, 1], [], []>} : vector<16x128xf32>, vector<128x128xf32>, vector<16x128xf32> -> vector<16x128xf32>
      %c0_15 = arith.constant 0 : index
      %c0_16 = arith.constant 0 : index
      %15 = vector.load %arg9[%c0_15, %c0_16] : memref<16x128xf32, #tpu.memory_space<vmem>>, vector<16x128xf32>
      %c0_17 = arith.constant 0 : index
      %c0_18 = arith.constant 0 : index
      %16 = vector.load %arg7[%c0_17, %c0_18] : memref<1x128xf32, #tpu.memory_space<vmem>>, vector<1x128xf32>
      %17 = vector.broadcast %16 : vector<1x128xf32> to vector<16x128xf32>
      %18 = arith.addf %15, %17 : vector<16x128xf32>
      %19 = arith.addf %18, %14 : vector<16x128xf32>
      %c0_19 = arith.constant 0 : index
      %c0_20 = arith.constant 0 : index
      %20 = vector.load %arg8[%c0_19, %c0_20] : memref<16x128xf32, #tpu.memory_space<vmem>>, vector<16x128xf32>
      tpu.vector_store %arg8[%c0_19, %c0_20], %19 {strides = array<i32>} : memref<16x128xf32, #tpu.memory_space<vmem>>, vector<16x128xf32>,
    } else {
    }
    return
  }
  func.func @transform_0(%arg0: i32, %arg1: i32, %arg2: i32) -> (i32, i32) {
    %c0_i32 = arith.constant 0 : i32
    return %arg0, %arg2 : i32, i32
  }
  func.func @transform_1(%arg0: i32, %arg1: i32, %arg2: i32) -> (i32, i32) {
    %c0_i32 = arith.constant 0 : i32
    return %arg2, %arg1 : i32, i32
  }
  func.func @transform_2(%arg0: i32, %arg1: i32, %arg2: i32) -> (i32, i32) {
    %c0_i32 = arith.constant 0 : i32
    %c0_i32_0 = arith.constant 0 : i32
    return %arg0, %c0_i32 : i32, i32
  }
  func.func @transform_3(%arg0: i32, %arg1: i32, %arg2: i32) -> (i32, i32) {
    %c0_i32 = arith.constant 0 : i32
    %c0_i32_0 = arith.constant 0 : i32
    return %c0_i32, %arg1 : i32, i32
  }
  func.func @transform_4(%arg0: i32, %arg1: i32, %arg2: i32) -> (i32, i32) {
    %c0_i32 = arith.constant 0 : i32
    %c0_i32_0 = arith.constant 0 : i32
    return %c0_i32, %arg1 : i32, i32
  }
  func.func @transform_5(%arg0: i32, %arg1: i32, %arg2: i32) -> (i32, i32) {
    %c0_i32 = arith.constant 0 : i32
    return %arg0, %arg1 : i32, i32
  }
}

</mosaic_0001>

<bundles_post_ra>
// kernel: tpu_custom_call.1
= control target key start
LH: loop header
LB: loop body
LE: loop exit
PB: predicated region body
PF: predicated region fallthrough
CT: control target
= control target key end

     0   :  { %10 = vsyncpa [#allocation4], 0  ;;  %s740_s0 = inlined_call_operand.hbm [shape: f32[16,128], index: 0, kind: input, shape index: {}]   ;;  %s741_s1 = inlined_call_operand.hbm [shape: f32[128,128], index: 1, kind: input, shape index: {}]   ;;  %s742_s2 = inlined_call_operand.hbm [shape: f32[16,128], index: 2, kind: input, shape index: {}]   ;;  %s743_s3 = inlined_call_operand.hbm [shape: f32[128,128], index: 3, kind: input, shape index: {}]   ;;  %s744_s4 = inlined_call_operand.vmem [shape: f32[1,128], index: 4, kind: input, shape index: {}]   ;;  %s745_s5 = inlined_call_operand.hbm [shape: f32[16,128], index: 5, kind: output, shape index: {}]  }
   0x1   :  { %11 = vsyncpa [#allocation7], 0 }
   0x2   :  { %12 = vsyncpa [#allocation10], 0 }
   0x3   :  { %13 = vsyncpa [#allocation5], 0  ;;  %s611_s18 = smov [#allocation6]   ;;  %s612_s20 = smov [#allocation3]  }
   0x4   :  { %s31_s19 = sshll.u32 %s611_s18, 4  ;;  %s19_s21 = sshll.u32 %s612_s20, 4  ;;  %s32_s19 = int_to_ptr.vmem [resolvable:$true] %s31_s19  ;;  %s648_s21 = int_to_ptr.vmem [resolvable:$true] %s19_s21 }
   0x5   :  { %s493_s24 = scalar_lea.hbm %s741_s1, 2048 }
   0x6   :  { %p494_p0 = scmp.ne.s32.totalorder %s741_s1, %s493_s24  ;;  %p497_p1 = scmp.lt.u32.totalorder %s493_s24, %s741_s1 }
   0x8   :  { %p499_p2 = pnand %p497_p1, %p494_p0 }
   0xa   :  { %502 = shalt.err (!%p499_p2)
}
   0xb   :  { %s503_s29 = scalar_lea.vmem %s32_s19, 2048  ;;  %p508_p4 = scmp.lt.s32.totalorder %s32_s19, %s32_s19 }
   0xc   :  { %p504_p3 = scmp.ne.s32.totalorder %s32_s19, %s503_s29  ;;  %p509_p5 = scmp.lt.s32.totalorder %s503_s29, %s503_s29 }
   0xe   :  { %p510_p6 = por %p509_p5, %p508_p4 }
  0x10   :  { %p511_p7 = pnand %p510_p6, %p504_p3 }
  0x12   :  { %514 = shalt.err (!%p511_p7)
}
  0x13   :  { %s613_s30 = smov 128   ;;  %s614_s6 = smov 8  }
  0x14   :  { %37 = dma.hbm_to_vmem [thread:$0]  %s741_s1, 2048, %s32_s19, [#allocation7], %s613_s30, %s613_s30, %s614_s6  }
  0x15   :  { %s515_s11 = scalar_lea.hbm %s740_s0, 256 }
  0x16   :  { %p516_p8 = scmp.ne.s32.totalorder %s740_s0, %s515_s11  ;;  %p519_p9 = scmp.lt.u32.totalorder %s515_s11, %s740_s0 }
  0x18   :  { %p521_p10 = pnand %p519_p9, %p516_p8 }
  0x1a   :  { %524 = shalt.err (!%p521_p10)
}
  0x1b   :  { %s525_s16 = scalar_lea.vmem %s648_s21, 256  ;;  %p530_p12 = scmp.lt.s32.totalorder %s648_s21, %s648_s21 }
  0x1c   :  { %p526_p11 = scmp.ne.s32.totalorder %s648_s21, %s525_s16  ;;  %p531_p13 = scmp.lt.s32.totalorder %s525_s16, %s525_s16 }
  0x1e   :  { %p532_p0 = por %p531_p13, %p530_p12 }
  0x20   :  { %p533_p1 = pnand %p532_p0, %p526_p11 }
  0x22   :  { %536 = shalt.err (!%p533_p1)
}
  0x23   :  { %25 = dma.hbm_to_vmem [thread:$0]  %s740_s0, 256, %s648_s21, [#allocation4], %s613_s30, %s613_s30, %s614_s6  }
  0x24   :  { %s615_s18 = smov [#allocation8]   ;;  %s616_s20 = smov [#allocation9]  }
  0x25   :  { %s43_s19 = sshll.u32 %s615_s18, 4  ;;  %s55_s22 = sshll.u32 %s616_s20, 4  ;;  %s44_s19 = int_to_ptr.vmem [resolvable:$true] %s43_s19  ;;  %s685_s22 = int_to_ptr.vmem [resolvable:$true] %s55_s22 }
  0x26   :  { %s537_s25 = scalar_lea.hbm %s742_s2, 256 }
  0x27   :  { %p538_p2 = scmp.ne.s32.totalorder %s742_s2, %s537_s25  ;;  %p541_p3 = scmp.lt.u32.totalorder %s537_s25, %s742_s2 }
  0x29   :  { %p543_p4 = pnand %p541_p3, %p538_p2 }
  0x2b   :  { %546 = shalt.err (!%p543_p4)
}
  0x2c   :  { %s547_s0 = scalar_lea.vmem %s44_s19, 256  ;;  %p552_p6 = scmp.lt.s32.totalorder %s44_s19, %s44_s19 }
  0x2d   :  { %p548_p5 = scmp.ne.s32.totalorder %s44_s19, %s547_s0  ;;  %p553_p7 = scmp.lt.s32.totalorder %s547_s0, %s547_s0 }
  0x2f   :  { %p554_p8 = por %p553_p7, %p552_p6 }
  0x31   :  { %p555_p9 = pnand %p554_p8, %p548_p5 }
  0x33   :  { %558 = shalt.err (!%p555_p9)
}
  0x34   :  { %49 = dma.hbm_to_vmem [thread:$0]  %s742_s2, 256, %s44_s19, [#allocation7], %s613_s30, %s613_s30, %s614_s6  }
  0x35   :  { %s559_s10 = scalar_lea.hbm %s743_s3, 2048 }
  0x36   :  { %p560_p10 = scmp.ne.s32.totalorder %s743_s3, %s559_s10  ;;  %p563_p11 = scmp.lt.u32.totalorder %s559_s10, %s743_s3 }
  0x38   :  { %p565_p12 = pnand %p563_p11, %p560_p10 }
  0x3a   :  { %568 = shalt.err (!%p565_p12)
}
  0x3b   :  { %s569_s15 = scalar_lea.vmem %s685_s22, 2048  ;;  %p574_p0 = scmp.lt.s32.totalorder %s685_s22, %s685_s22 }
  0x3c   :  { %p570_p13 = scmp.ne.s32.totalorder %s685_s22, %s569_s15  ;;  %p575_p1 = scmp.lt.s32.totalorder %s569_s15, %s569_s15 }
  0x3e   :  { %p576_p2 = por %p575_p1, %p574_p0 }
  0x40   :  { %p577_p3 = pnand %p576_p2, %p570_p13 }
  0x42   :  { %580 = shalt.err (!%p577_p3)
}
  0x43   :  { %61 = dma.hbm_to_vmem [thread:$0]  %s743_s3, 2048, %s685_s22, [#allocation10], %s613_s30, %s613_s30, %s614_s6  }
  0x44   :  { %603 = dma.done.wait [#allocation4], 256  }
  0x45   :  { %604 = vsyncadd [#allocation4], 4294967040 }
  0x46   :  { %605 = dma.done.wait [#allocation7], 2304  }
  0x47   :  { %606 = vsyncadd [#allocation7], 4294964992 }
  0x48   :  { %607 = dma.done.wait [#allocation10], 2048  }
  0x49   :  { %608 = vsyncadd [#allocation10], 4294965248  ;;  %v86_v0 = vld [vmem:[#allocation6] sm:$0xff]  ;;  %v87_v1 = vld [vmem:[#allocation6 + $0x8] sm:$0xff]  ;;  %s617_s17 = smov [#allocation11]  }
  0x4a   :  { %v186_v2 = vld [vmem:[#allocation9] sm:$0xff]  ;;  %v418_v3 = vpack.c.bf16 %v87_v1, %v86_v0  ;;  %v187_v4 = vld [vmem:[#allocation9 + $0x8] sm:$0xff]  ;;  %v188_v9 = vld [vmem:[#allocation9 + $0x10] sm:$0xff]  ;;  %s297_s18 = sshll.u32 %s617_s17, 4  ;;  %s298_s18 = int_to_ptr.vmem [resolvable:$true] %s297_s18 }
  0x4b   :  { %v88_v5 = vld [vmem:[#allocation6 + $0x10] sm:$0xff]  ;;  %v89_v6 = vld [vmem:[#allocation6 + $0x18] sm:$0xff]  ;;  %v450_v7 = vpack.c.bf16 %v187_v4, %v186_v2  ;;  %v189_v10 = vld [vmem:[#allocation9 + $0x18] sm:$0xff]  ;;  %s581_s19 = scalar_lea.vmem %s298_s18, 256  ;;  %p586_p5 = scmp.lt.s32.totalorder %s298_s18, %s298_s18 }
  0x4c   :  { %v422_v8 = vpack.c.bf16 %v89_v6, %v88_v5  ;;  %v90_v11 = vld [vmem:[#allocation6 + $0x20] sm:$0xff]  ;;  %419 = vmatprep.subr.bf16.mxu1 %v418_v3  ;;  %v454_v12 = vpack.c.bf16 %v189_v10, %v188_v9  ;;  %v91_v13 = vld [vmem:[#allocation6 + $0x28] sm:$0xff]  ;;  %v190_v14 = vld [vmem:[#allocation9 + $0x20] sm:$0xff]  ;;  %p582_p4 = scmp.ne.s32.totalorder %s298_s18, %s581_s19  ;;  %p587_p6 = scmp.lt.s32.totalorder %s581_s19, %s581_s19 }
  0x4d   :  { %v191_v15 = vld [vmem:[#allocation9 + $0x28] sm:$0xff]  ;;  %451 = vmatprep.subr.bf16.mxu0 %v450_v7  ;;  %421 = vmatpush3.bf16.msra.mxu1 %v418_v3  ;;  %v426_v16 = vpack.c.bf16 %v91_v13, %v90_v11  ;;  %v92_v18 = vld [vmem:[#allocation6 + $0x30] sm:$0xff]  ;;  %v192_v20 = vld [vmem:[#allocation9 + $0x30] sm:$0xff] }
  0x4e   :  { %453 = vmatpush3.bf16.msra.mxu0 %v450_v7  ;;  %423 = vmatprep.subr.bf16.mxu1 %v422_v8  ;;  %v458_v17 = vpack.c.bf16 %v191_v15, %v190_v14  ;;  %v93_v19 = vld [vmem:[#allocation6 + $0x38] sm:$0xff]  ;;  %v193_v21 = vld [vmem:[#allocation9 + $0x38] sm:$0xff]  ;;  %v94_v24 = vld [vmem:[#allocation6 + $0x40] sm:$0xff]  ;;  %p588_p7 = por %p587_p6, %p586_p5 }
  0x4f   :  { %455 = vmatprep.subr.bf16.mxu0 %v454_v12  ;;  %v430_v22 = vpack.c.bf16 %v93_v19, %v92_v18  ;;  %v462_v23 = vpack.c.bf16 %v193_v21, %v192_v20  ;;  %v95_v25 = vld [vmem:[#allocation6 + $0x48] sm:$0xff]  ;;  %v84_v26 = vld [vmem:[#allocation3] sm:$0xff]  ;;  %v195_v28 = vld [vmem:[#allocation9 + $0x48] sm:$0xff] }
  0x50   :  { %v194_v27 = vld [vmem:[#allocation9 + $0x40] sm:$0xff]  ;;  %380 = vmatprep.mubr.f32.mxu1 %v84_v26  ;;  %v184_v29 = vld [vmem:[#allocation8] sm:$0xff]  ;;  %v434_v30 = vpack.c.bf16 %v95_v25, %v94_v24  ;;  %v97_v33 = vld [vmem:[#allocation6 + $0x58] sm:$0xff]  ;;  %p589_p8 = pnand %p588_p7, %p582_p4 }
  0x51   :  { %425 = vmatpush3.bf16.msra.mxu1 %v422_v8  ;;  %415 = vmatprep.mubr.f32.mxu0 %v184_v29  ;;  %v466_v31 = vpack.c.bf16 %v195_v28, %v194_v27  ;;  %v96_v32 = vld [vmem:[#allocation6 + $0x50] sm:$0xff]  ;;  %v196_v34 = vld [vmem:[#allocation9 + $0x50] sm:$0xff]  ;;  %v197_v35 = vld [vmem:[#allocation9 + $0x58] sm:$0xff] }
  0x52   :  { %457 = vmatpush3.bf16.msra.mxu0 %v454_v12  ;;  %427 = vmatprep.subr.bf16.mxu1 %v426_v16  ;;  %v438_v36 = vpack.c.bf16 %v97_v33, %v96_v32  ;;  %v470_v37 = vpack.c.bf16 %v197_v35, %v196_v34  ;;  %v98_v38 = vld [vmem:[#allocation6 + $0x60] sm:$0xff]  ;;  %v99_v39 = vld [vmem:[#allocation6 + $0x68] sm:$0xff]  ;;  %v198_v40 = vld [vmem:[#allocation9 + $0x60] sm:$0xff] }
  0x53   :  { %459 = vmatprep.subr.bf16.mxu0 %v458_v17  ;;  %v199_v41 = vld [vmem:[#allocation9 + $0x68] sm:$0xff]  ;;  %v442_v42 = vpack.c.bf16 %v99_v39, %v98_v38  ;;  %v100_v44 = vld [vmem:[#allocation6 + $0x70] sm:$0xff]  ;;  %v200_v46 = vld [vmem:[#allocation9 + $0x70] sm:$0xff] }
  0x54   :  { %v474_v43 = vpack.c.bf16 %v199_v41, %v198_v40  ;;  %v101_v45 = vld [vmem:[#allocation6 + $0x78] sm:$0xff]  ;;  %v201_v47 = vld [vmem:[#allocation9 + $0x78] sm:$0xff]  ;;  %v311_v54 = vld [vmem:[%s744_s4] ss:$0 sm:$0xff] }
  0x55   :  { %429 = vmatpush3.bf16.msra.mxu1 %v426_v16  ;;  %v446_v48 = vpack.c.bf16 %v101_v45, %v100_v44  ;;  %v478_v49 = vpack.c.bf16 %v201_v47, %v200_v46  ;;  %v85_v50 = vld [vmem:[#allocation3 + $0x8] sm:$0xff]  ;;  %v185_v51 = vld [vmem:[#allocation8 + $0x8] sm:$0xff] }
  0x56   :  { %461 = vmatpush3.bf16.msra.mxu0 %v458_v17  ;;  %431 = vmatprep.subr.bf16.mxu1 %v430_v22 }
  0x57   :  { %463 = vmatprep.subr.bf16.mxu0 %v462_v23 }
  0x59   :  { %433 = vmatpush3.bf16.msra.mxu1 %v430_v22 }
  0x5a   :  { %465 = vmatpush3.bf16.msra.mxu0 %v462_v23  ;;  %435 = vmatprep.subr.bf16.mxu1 %v434_v30 }
  0x5b   :  { %467 = vmatprep.subr.bf16.mxu0 %v466_v31 }
  0x5d   :  { %437 = vmatpush3.bf16.msra.mxu1 %v434_v30 }
  0x5e   :  { %469 = vmatpush3.bf16.msra.mxu0 %v466_v31  ;;  %439 = vmatprep.subr.bf16.mxu1 %v438_v36 }
  0x5f   :  { %471 = vmatprep.subr.bf16.mxu0 %v470_v37 }
  0x61   :  { %441 = vmatpush3.bf16.msra.mxu1 %v438_v36 }
  0x62   :  { %473 = vmatpush3.bf16.msra.mxu0 %v470_v37  ;;  %443 = vmatprep.subr.bf16.mxu1 %v442_v42 }
  0x63   :  { %475 = vmatprep.subr.bf16.mxu0 %v474_v43 }
  0x65   :  { %445 = vmatpush3.bf16.msra.mxu1 %v442_v42 }
  0x66   :  { %477 = vmatpush3.bf16.msra.mxu0 %v474_v43  ;;  %447 = vmatprep.subr.bf16.mxu1 %v446_v48 }
  0x67   :  { %479 = vmatprep.subr.bf16.mxu0 %v478_v49 }
  0x69   :  { %449 = vmatpush3.bf16.msra.mxu1 %v446_v48 }
  0x6a   :  { %481 = vmatpush3.bf16.msra.mxu0 %v478_v49 }
  0x6c   :  { %381 = vmatmul.mubr.f32.vlgmr.msra.gmra.mrb[0].mxu1 %v85_v50 }
  0x6d   :  { %416 = vmatmul.mubr.f32.vlgmr.msra.gmra.mrb[0].mxu0 %v185_v51 }
 0x13f   :  { %v382_v52 = vpop.f32.mrb[0].mxu1 }
 0x140   :  { %v417_v53 = vpop.f32.mrb[0].mxu0  ;;  %v168_v55 = vpop.f32.mrb[1].mxu1 }
 0x141   :  { %v482_v56 = vadd.f32 %v417_v53, %v382_v52  ;;  %v268_v57 = vpop.f32.mrb[1].mxu0 }
 0x142   :  { %v484_v58 = vadd.f32 %v268_v57, %v168_v55 }
 0x143   :  { %v483_v59 = vadd.f32 %v482_v56, %v311_v54 }
 0x144   :  { %v485_v60 = vadd.f32 %v484_v58, %v311_v54 }
 0x145   :  { %291 = vst [vmem:[#allocation11 + $0x8] sm:$0xff] %v483_v59 }
 0x146   :  { %290 = vst [vmem:[#allocation11] sm:$0xff] %v485_v60 }
 0x147   :  { %592 = shalt.err (!%p589_p8)
}
 0x148   :  { %s593_s22 = scalar_lea.hbm %s745_s5, 256 }
 0x149   :  { %p594_p9 = scmp.ne.s32.totalorder %s745_s5, %s593_s22  ;;  %p597_p10 = scmp.lt.u32.totalorder %s593_s22, %s745_s5 }
 0x14b   :  { %p599_p11 = pnand %p597_p10, %p594_p9 }
 0x14d   :  { %602 = shalt.err (!%p599_p11)
}
 0x14e   :  { %303 = dma.vmem_to_hbm [thread:$0]  %s298_s18, 256, %s745_s5, [#allocation5], %s613_s30, %s613_s30, %s614_s6  }
 0x14f   :  { %609 = dma.done.wait [#allocation5], 256  }
 0x150   :  { %610 = vsyncadd [#allocation5], 4294967040 }
 0x151   :  { %307 = vsyncpa [#allocation4], 1 }
 0x152   :  { %308 = vsyncpa [#allocation7], 1 }
 0x153   :  { %309 = vsyncpa [#allocation10], 1 }
 0x154   :  { %310 = vsyncpa [#allocation5], 1 }

</bundles_post_ra>
